<compile_context>
chip_gen: v6e
topology: v6e:2x2x1
jax: 0.10.0
libtpu: 0.0.40
codegen_flags: <defaults>
</compile_context>

<pallas_src>
import functools
import math

import jax
import jax.numpy as jnp
from jax import lax
from jax.experimental import pallas as pl
from jax.experimental.pallas import tpu as pltpu


# ---------------------------------------------------------------------------
# Kernel 1: fused Q|K|V projection — one flat GEMM, head-major outputs.
# ---------------------------------------------------------------------------
def _qkv_proj_kernel(x_ref, w_ref, b_ref, q_ref, k_ref, v_ref, *,
                     num_heads, head_dim, matmul_dtype):
    H, hd = num_heads, head_dim
    d_att = H * hd
    x = x_ref[0]                                            # (tS, d_in)
    w = w_ref[...]                                          # (d_in, 3*d_att)
    qkv = jnp.dot(x.astype(matmul_dtype), w.astype(matmul_dtype),
                  preferred_element_type=jnp.float32) + b_ref[...]  # (tS, 3*d_att)
    # One-time layout conversion to head-major (leading-dim) Q/K/V.  For hd a
    # multiple of 128 these are clean lane-aligned slices; either way the cost
    # is paid once per token in the projection epilogue, never per kv step.
    for h in range(H):
        q_ref[0, h] = qkv[:, 0 * d_att + h * hd:0 * d_att + (h + 1) * hd].astype(q_ref.dtype)
        k_ref[0, h] = qkv[:, 1 * d_att + h * hd:1 * d_att + (h + 1) * hd].astype(k_ref.dtype)
        v_ref[0, h] = qkv[:, 2 * d_att + h * hd:2 * d_att + (h + 1) * hd].astype(v_ref.dtype)


# ---------------------------------------------------------------------------
# Kernel 2: flash attention (online softmax over kv tiles) + mean pool.
# ---------------------------------------------------------------------------
def _flash_pool_kernel(q_ref, k_ref, v_ref, o_ref, m_sc, l_sc, acc_sc, *,
                       seq_len, head_dim, matmul_dtype):
    kv = pl.program_id(2)

    @pl.when(kv == 0)
    def _init():
        m_sc[...] = jnp.full(m_sc.shape, -jnp.inf, jnp.float32)
        l_sc[...] = jnp.zeros(l_sc.shape, jnp.float32)
        acc_sc[...] = jnp.zeros(acc_sc.shape, jnp.float32)

    q = q_ref[0, 0]                                         # (S, hd)
    k = k_ref[0, 0]                                         # (tkv, hd)
    v = v_ref[0, 0]                                         # (tkv, hd)

    # Energy tile: contract last dims of Q and K (A @ B^T) — no K transpose.
    s = lax.dot_general(q.astype(matmul_dtype), k.astype(matmul_dtype),
                        (((1,), (1,)), ((), ())),
                        preferred_element_type=jnp.float32)
    s = s * (1.0 / math.sqrt(head_dim))                     # (S, tkv) f32

    m_prev = m_sc[...]
    m_new = jnp.maximum(m_prev, jnp.max(s, axis=-1, keepdims=True))
    alpha = jnp.exp(m_prev - m_new)
    p = jnp.exp(s - m_new)                                  # (S, tkv) f32
    l_sc[...] = alpha * l_sc[...] + jnp.sum(p, axis=-1, keepdims=True)
    acc_sc[...] = alpha * acc_sc[...] + jnp.dot(
        p.astype(matmul_dtype), v.astype(matmul_dtype),
        preferred_element_type=jnp.float32)
    m_sc[...] = m_new

    @pl.when(kv == pl.num_programs(2) - 1)
    def _finalize():
        inv_l = pl.reciprocal(l_sc[...], approx=True)       # (S, 1) EUP
        ctx = acc_sc[...] * inv_l                           # (S, hd)
        pooled = jnp.sum(ctx, axis=0, keepdims=True) * (1.0 / seq_len)
        o_ref[0, 0] = pooled.astype(o_ref.dtype)            # (1, hd)


# ---------------------------------------------------------------------------
# Kernel 3: output projection — single GEMM (replaces per-head loop).
# ---------------------------------------------------------------------------
def _output_proj_kernel(pooled_ref, wo_ref, bo_ref, out_ref, *, matmul_dtype):
    ctx = jnp.dot(pooled_ref[...].astype(matmul_dtype),
                  wo_ref[...].astype(matmul_dtype),
                  preferred_element_type=jnp.float32) + bo_ref[...]
    out_ref[...] = ctx.astype(out_ref.dtype)


# ---------------------------------------------------------------------------
# Wrapper.
# ---------------------------------------------------------------------------
def _pick_tile(n, preferred):
    """Largest multiple-of-8 tile <= preferred dividing n (n itself if small)."""
    if n <= preferred:
        return n
    for t in range(preferred - preferred % 8, 7, -8):
        if n % t == 0:
            return t
    return n


def _compiler_params(semantics, resident_bytes):
    # Double-buffered pipeline copies + headroom; cap below v7x's 64 MiB
    # physical VMEM (scoped defaults are only 16/32 MiB).
    limit = int(min(max(4 * resident_bytes, 8 * 2 ** 20), 48 * 2 ** 20))
    return pltpu.CompilerParams(dimension_semantics=semantics,
                                vmem_limit_bytes=limit)


def shared_self_attention(x, params, *, num_heads, matmul_dtype=jnp.float32,
                          kv_block=256, seq_block=256):
    """Forward of SharedSelfAttention (eval mode, mask=None).

    x: (B, S, D_in) or (S, D_in) float32.  Returns (B, D_att) context vectors
    ((D_att,) when B == 1, matching the PyTorch squeeze)."""
    if x.ndim == 2:
        x = x[None]
    batch, seq, d_in = x.shape
    d_att = params['wo'].shape[1]
    assert d_att % num_heads == 0
    head_dim = d_att // num_heads
    f_dim = 3 * d_att
    itemsize = jnp.dtype(matmul_dtype).itemsize

    # Host-side one-time packing: columns ordered [Q | K | V], each internally
    # (head, head_dim) — identical to the reference d_att ordering.
    w_qkv = jnp.concatenate([params['wq'], params['wk'], params['wv']], axis=1)
    b_qkv = jnp.concatenate([params['bq'], params['bk'], params['bv']], axis=1)
    wo, bo = params['wo'], params['bo']

    # ---------------- kernel 1: fused QKV projection ----------------------
    ts = _pick_tile(seq, seq_block)
    n_seq_tiles = seq // ts
    qkv_shape = jax.ShapeDtypeStruct((batch, num_heads, seq, head_dim),
                                     matmul_dtype)
    proj_resident = (4 * ts * d_in + 4 * d_in * f_dim + 4 * f_dim
                     + 3 * itemsize * num_heads * ts * head_dim)
    q, k, v = pl.pallas_call(
        functools.partial(_qkv_proj_kernel, num_heads=num_heads,
                          head_dim=head_dim, matmul_dtype=matmul_dtype),
        out_shape=(qkv_shape, qkv_shape, qkv_shape),
        grid_spec=pltpu.PrefetchScalarGridSpec(
            num_scalar_prefetch=0,
            grid=(batch, n_seq_tiles),
            in_specs=[
                pl.BlockSpec((1, ts, d_in), lambda b, s: (b, s, 0)),
                pl.BlockSpec((d_in, f_dim), lambda b, s: (0, 0)),
                pl.BlockSpec((1, f_dim), lambda b, s: (0, 0)),
            ],
            out_specs=[
                pl.BlockSpec((1, num_heads, ts, head_dim),
                             lambda b, s: (b, 0, s, 0)),
            ] * 3,
        ),
        compiler_params=_compiler_params(("parallel", "parallel"),
                                         proj_resident),
        cost_estimate=pl.CostEstimate(
            flops=2 * batch * seq * d_in * f_dim,
            transcendentals=0,
            bytes_accessed=4 * (x.size + w_qkv.size + b_qkv.size)
            + 3 * itemsize * batch * seq * d_att),
    )(x, w_qkv, b_qkv)

    # ---------------- kernel 2: flash attention + mean pool ----------------
    tkv = _pick_tile(seq, kv_block)
    n_kv = seq // tkv
    attn_resident = (itemsize * (seq * head_dim + 2 * tkv * head_dim)
                     + 4 * (2 * seq + seq * head_dim + head_dim))
    pooled = pl.pallas_call(
        functools.partial(_flash_pool_kernel, seq_len=seq, head_dim=head_dim,
                          matmul_dtype=matmul_dtype),
        out_shape=jax.ShapeDtypeStruct((batch, num_heads, 1, head_dim),
                                       jnp.float32),
        grid_spec=pltpu.PrefetchScalarGridSpec(
            num_scalar_prefetch=0,
            grid=(batch, num_heads, n_kv),
            in_specs=[
                pl.BlockSpec((1, 1, seq, head_dim),
                             lambda b, h, kv: (b, h, 0, 0)),
                pl.BlockSpec((1, 1, tkv, head_dim),
                             lambda b, h, kv: (b, h, kv, 0)),
                pl.BlockSpec((1, 1, tkv, head_dim),
                             lambda b, h, kv: (b, h, kv, 0)),
            ],
            out_specs=pl.BlockSpec((1, 1, 1, head_dim),
                                   lambda b, h, kv: (b, h, 0, 0)),
            scratch_shapes=[
                pltpu.VMEM((seq, 1), jnp.float32),          # running max
                pltpu.VMEM((seq, 1), jnp.float32),          # running denom
                pltpu.VMEM((seq, head_dim), jnp.float32),   # running numerator
            ],
        ),
        compiler_params=_compiler_params(
            ("parallel", "parallel", "arbitrary"), attn_resident),
        cost_estimate=pl.CostEstimate(
            flops=4 * batch * num_heads * seq * seq * head_dim,
            transcendentals=batch * num_heads * (seq * seq + seq),
            bytes_accessed=3 * itemsize * batch * seq * d_att
            + 4 * batch * d_att),
    )(q, k, v)

    # (B, H, 1, hd) -> (B, d_att): contiguous => free view; column order
    # h*head_dim + e matches the reference weighted_values layout, so the
    # original wo/bo can be used unchanged.
    pooled = pooled.reshape(batch, d_att)

    # ---------------- kernel 3: output projection --------------------------
    vmem = pl.BlockSpec(memory_space=pltpu.MemorySpace.VMEM)
    context = pl.pallas_call(
        functools.partial(_output_proj_kernel, matmul_dtype=matmul_dtype),
        out_shape=jax.ShapeDtypeStruct((batch, d_att), jnp.float32),
        in_specs=[vmem, vmem, vmem],
        out_specs=vmem,
        cost_estimate=pl.CostEstimate(
            flops=2 * batch * d_att * d_att,
            transcendentals=0,
            bytes_accessed=4 * (2 * batch * d_att + d_att * d_att + d_att)),
    )(pooled, wo, bo)

    if batch == 1:
        return context[0]
    return context


# ---------------------------------------------------------------------------
# Deterministic synthetic parameters + pure-JAX reference.
# ---------------------------------------------------------------------------
def _init_params(key, input_dim, attention_dim):
    keys = jax.random.split(key, 8)

    def lin(kw, kb, fan_in, fan_out):
        bound = 1.0 / math.sqrt(fan_in)
        w = jax.random.uniform(kw, (fan_in, fan_out), jnp.float32, -bound, bound)
        b = jax.random.uniform(kb, (1, fan_out), jnp.float32, -bound, bound)
        return w, b

    wq, bq = lin(keys[0], keys[1], input_dim, attention_dim)
    wk, bk = lin(keys[2], keys[3], input_dim, attention_dim)
    wv, bv = lin(keys[4], keys[5], input_dim, attention_dim)
    wo, bo = lin(keys[6], keys[7], attention_dim, attention_dim)
    return dict(wq=wq, bq=bq, wk=wk, bk=bk, wv=wv, bv=bv, wo=wo, bo=bo)


def _reference(x, params, num_heads):
    """Pure-JAX replica of the PyTorch forward pass (eval mode, mask=None)."""
    b, s, _ = x.shape
    d_att = params['wo'].shape[1]
    hd = d_att // num_heads
    q = x @ params['wq'] + params['bq']
    k = x @ params['wk'] + params['bk']
    v = x @ params['wv'] + params['bv']
    q = q.reshape(b, s, num_heads, hd).transpose(0, 2, 1, 3)
    k = k.reshape(b, s, num_heads, hd).transpose(0, 2, 1, 3)
    v = v.reshape(b, s, num_heads, hd).transpose(0, 2, 1, 3)
    energy = jnp.einsum('bhqd,bhkd->bhqk', q, k) / math.sqrt(hd)
    attn = jax.nn.softmax(energy, axis=-1)
    wv_ = jnp.einsum('bhqk,bhkd->bhqd', attn, v)
    wv_ = wv_.transpose(0, 2, 1, 3).reshape(b, s, d_att)
    out = wv_ @ params['wo'] + params['bo']
    return out.mean(axis=1)


if __name__ == "__main__":
    INPUT_DIM = 32
    ATTENTION_DIM = 32
    HEADS = 2
    BATCH = 2
    SEQ = 8

    key = jax.random.PRNGKey(0)
    k_x, k_p = jax.random.split(key)
    x = jax.random.normal(k_x, (BATCH, SEQ, INPUT_DIM), dtype=jnp.float32)
    params = _init_params(k_p, INPUT_DIM, ATTENTION_DIM)

    ref = _reference(x, params, HEADS)

    # f32 MXU operands: tight check (slack covers the approx EUP reciprocal).
    out = jax.block_until_ready(
        shared_self_attention(x, params, num_heads=HEADS))
    assert out.shape == (BATCH, ATTENTION_DIM), out.shape
    assert jnp.allclose(out, ref, atol=2e-3, rtol=2e-3), \
        float(jnp.max(jnp.abs(out - ref)))

    # bf16 MXU operands (v6e/v7x fast path; softmax math stays f32): loose check.
    out_bf16 = jax.block_until_ready(
        shared_self_attention(x, params, num_heads=HEADS,
                              matmul_dtype=jnp.bfloat16))
    assert out_bf16.shape == (BATCH, ATTENTION_DIM)
    assert jnp.allclose(out_bf16, ref, atol=5e-2, rtol=5e-2), \
        float(jnp.max(jnp.abs(out_bf16 - ref)))

    print("KERNEL_OK")
</pallas_src>

<mosaic_0001>
module attributes {stable_mosaic.version = 11 : i64} {
  func.func @_qkv_proj_kernel(%arg0: i32, %arg1: i32, %arg2: memref<1x8x32xf32, #tpu.memory_space<vmem>>, %arg3: memref<32x96xf32, #tpu.memory_space<vmem>>, %arg4: memref<1x96xf32, #tpu.memory_space<vmem>>, %arg5: memref<1x2x8x16xf32, #tpu.memory_space<vmem>>, %arg6: memref<1x2x8x16xf32, #tpu.memory_space<vmem>>, %arg7: memref<1x2x8x16xf32, #tpu.memory_space<vmem>>) attributes {dimension_semantics = [#tpu.dimension_semantics<parallel>, #tpu.dimension_semantics<parallel>], iteration_bounds = array<i64: 2, 1>, scalar_prefetch = 0 : i64, scratch_operands = 0 : i64, tpu.core_type = #tpu.core_type<tc>, window_params = [{transform_indices = @transform_0, window_bounds = array<i64: 1, 8, 32>}, {pipeline_mode = #tpu.pipeline_mode<synchronous>, transform_indices = @transform_1, window_bounds = array<i64: 32, 96>}, {pipeline_mode = #tpu.pipeline_mode<synchronous>, transform_indices = @transform_2, window_bounds = array<i64: 1, 96>}, {transform_indices = @transform_3, window_bounds = array<i64: 1, 2, 8, 16>}, {transform_indices = @transform_4, window_bounds = array<i64: 1, 2, 8, 16>}, {transform_indices = @transform_5, window_bounds = array<i64: 1, 2, 8, 16>}]} {
    %c0 = arith.constant 0 : index
    %c0_0 = arith.constant 0 : index
    %c0_1 = arith.constant 0 : index
    %0 = vector.load %arg2[%c0, %c0_0, %c0_1] : memref<1x8x32xf32, #tpu.memory_space<vmem>>, vector<1x8x32xf32>
    %1 = vector.shape_cast %0 : vector<1x8x32xf32> to vector<8x32xf32>
    %c0_2 = arith.constant 0 : index
    %c0_3 = arith.constant 0 : index
    %2 = vector.load %arg3[%c0_2, %c0_3] : memref<32x96xf32, #tpu.memory_space<vmem>>, vector<32x96xf32>
    %cst = arith.constant dense<0.000000e+00> : vector<8x96xf32>
    %3 = tpu.matmul %1, %2, %cst {dimension_numbers = #tpu.dot_dimension_numbers<[1], [0], [0], [1], [0, 0, 1, 1], [], []>} : vector<8x32xf32>, vector<32x96xf32>, vector<8x96xf32> -> vector<8x96xf32>
    %c0_4 = arith.constant 0 : index
    %c0_5 = arith.constant 0 : index
    %4 = vector.load %arg4[%c0_4, %c0_5] : memref<1x96xf32, #tpu.memory_space<vmem>>, vector<1x96xf32>
    %5 = vector.broadcast %4 : vector<1x96xf32> to vector<8x96xf32>
    %6 = arith.addf %3, %5 : vector<8x96xf32>
    %7 = vector.extract_strided_slice %6 {offsets = [0, 0], sizes = [8, 16], strides = [1, 1]} : vector<8x96xf32> to vector<8x16xf32>
    %c0_6 = arith.constant 0 : index
    %c0_7 = arith.constant 0 : index
    %c0_8 = arith.constant 0 : index
    %c0_9 = arith.constant 0 : index
    %8 = vector.load %arg5[%c0_6, %c0_7, %c0_8, %c0_9] : memref<1x2x8x16xf32, #tpu.memory_space<vmem>>, vector<1x1x8x16xf32>
    %9 = vector.shape_cast %8 : vector<1x1x8x16xf32> to vector<8x16xf32>
    %10 = vector.shape_cast %7 : vector<8x16xf32> to vector<1x1x8x16xf32>
    tpu.vector_store %arg5[%c0_6, %c0_7, %c0_8, %c0_9], %10 {strides = array<i32>} : memref<1x2x8x16xf32, #tpu.memory_space<vmem>>, vector<1x1x8x16xf32>,
    %11 = vector.extract_strided_slice %6 {offsets = [0, 32], sizes = [8, 16], strides = [1, 1]} : vector<8x96xf32> to vector<8x16xf32>
    %c0_10 = arith.constant 0 : index
    %c0_11 = arith.constant 0 : index
    %c0_12 = arith.constant 0 : index
    %c0_13 = arith.constant 0 : index
    %12 = vector.load %arg6[%c0_10, %c0_11, %c0_12, %c0_13] : memref<1x2x8x16xf32, #tpu.memory_space<vmem>>, vector<1x1x8x16xf32>
    %13 = vector.shape_cast %12 : vector<1x1x8x16xf32> to vector<8x16xf32>
    %14 = vector.shape_cast %11 : vector<8x16xf32> to vector<1x1x8x16xf32>
    tpu.vector_store %arg6[%c0_10, %c0_11, %c0_12, %c0_13], %14 {strides = array<i32>} : memref<1x2x8x16xf32, #tpu.memory_space<vmem>>, vector<1x1x8x16xf32>,
    %15 = vector.extract_strided_slice %6 {offsets = [0, 64], sizes = [8, 16], strides = [1, 1]} : vector<8x96xf32> to vector<8x16xf32>
    %c0_14 = arith.constant 0 : index
    %c0_15 = arith.constant 0 : index
    %c0_16 = arith.constant 0 : index
    %c0_17 = arith.constant 0 : index
    %16 = vector.load %arg7[%c0_14, %c0_15, %c0_16, %c0_17] : memref<1x2x8x16xf32, #tpu.memory_space<vmem>>, vector<1x1x8x16xf32>
    %17 = vector.shape_cast %16 : vector<1x1x8x16xf32> to vector<8x16xf32>
    %18 = vector.shape_cast %15 : vector<8x16xf32> to vector<1x1x8x16xf32>
    tpu.vector_store %arg7[%c0_14, %c0_15, %c0_16, %c0_17], %18 {strides = array<i32>} : memref<1x2x8x16xf32, #tpu.memory_space<vmem>>, vector<1x1x8x16xf32>,
    %19 = vector.extract_strided_slice %6 {offsets = [0, 16], sizes = [8, 16], strides = [1, 1]} : vector<8x96xf32> to vector<8x16xf32>
    %c0_18 = arith.constant 0 : index
    %c1 = arith.constant 1 : index
    %c0_19 = arith.constant 0 : index
    %c0_20 = arith.constant 0 : index
    %20 = vector.load %arg5[%c0_18, %c1, %c0_19, %c0_20] : memref<1x2x8x16xf32, #tpu.memory_space<vmem>>, vector<1x1x8x16xf32>
    %21 = vector.shape_cast %20 : vector<1x1x8x16xf32> to vector<8x16xf32>
    %22 = vector.shape_cast %19 : vector<8x16xf32> to vector<1x1x8x16xf32>
    tpu.vector_store %arg5[%c0_18, %c1, %c0_19, %c0_20], %22 {strides = array<i32>} : memref<1x2x8x16xf32, #tpu.memory_space<vmem>>, vector<1x1x8x16xf32>,
    %23 = vector.extract_strided_slice %6 {offsets = [0, 48], sizes = [8, 16], strides = [1, 1]} : vector<8x96xf32> to vector<8x16xf32>
    %c0_21 = arith.constant 0 : index
    %c1_22 = arith.constant 1 : index
    %c0_23 = arith.constant 0 : index
    %c0_24 = arith.constant 0 : index
    %24 = vector.load %arg6[%c0_21, %c1_22, %c0_23, %c0_24] : memref<1x2x8x16xf32, #tpu.memory_space<vmem>>, vector<1x1x8x16xf32>
    %25 = vector.shape_cast %24 : vector<1x1x8x16xf32> to vector<8x16xf32>
    %26 = vector.shape_cast %23 : vector<8x16xf32> to vector<1x1x8x16xf32>
    tpu.vector_store %arg6[%c0_21, %c1_22, %c0_23, %c0_24], %26 {strides = array<i32>} : memref<1x2x8x16xf32, #tpu.memory_space<vmem>>, vector<1x1x8x16xf32>,
    %27 = vector.extract_strided_slice %6 {offsets = [0, 80], sizes = [8, 16], strides = [1, 1]} : vector<8x96xf32> to vector<8x16xf32>
    %c0_25 = arith.constant 0 : index
    %c1_26 = arith.constant 1 : index
    %c0_27 = arith.constant 0 : index
    %c0_28 = arith.constant 0 : index
    %28 = vector.load %arg7[%c0_25, %c1_26, %c0_27, %c0_28] : memref<1x2x8x16xf32, #tpu.memory_space<vmem>>, vector<1x1x8x16xf32>
    %29 = vector.shape_cast %28 : vector<1x1x8x16xf32> to vector<8x16xf32>
    %30 = vector.shape_cast %27 : vector<8x16xf32> to vector<1x1x8x16xf32>
    tpu.vector_store %arg7[%c0_25, %c1_26, %c0_27, %c0_28], %30 {strides = array<i32>} : memref<1x2x8x16xf32, #tpu.memory_space<vmem>>, vector<1x1x8x16xf32>,
    return
  }
  func.func @transform_0(%arg0: i32, %arg1: i32) -> (i32, i32, i32) {
    %c0_i32 = arith.constant 0 : i32
    %c0_i32_0 = arith.constant 0 : i32
    return %arg0, %arg1, %c0_i32 : i32, i32, i32
  }
  func.func @transform_1(%arg0: i32, %arg1: i32) -> (i32, i32) {
    %c0_i32 = arith.constant 0 : i32
    %c0_i32_0 = arith.constant 0 : i32
    %c0_i32_1 = arith.constant 0 : i32
    return %c0_i32, %c0_i32_0 : i32, i32
  }
  func.func @transform_2(%arg0: i32, %arg1: i32) -> (i32, i32) {
    %c0_i32 = arith.constant 0 : i32
    %c0_i32_0 = arith.constant 0 : i32
    %c0_i32_1 = arith.constant 0 : i32
    return %c0_i32, %c0_i32_0 : i32, i32
  }
  func.func @transform_3(%arg0: i32, %arg1: i32) -> (i32, i32, i32, i32) {
    %c0_i32 = arith.constant 0 : i32
    %c0_i32_0 = arith.constant 0 : i32
    %c0_i32_1 = arith.constant 0 : i32
    return %arg0, %c0_i32, %arg1, %c0_i32_0 : i32, i32, i32, i32
  }
  func.func @transform_4(%arg0: i32, %arg1: i32) -> (i32, i32, i32, i32) {
    %c0_i32 = arith.constant 0 : i32
    %c0_i32_0 = arith.constant 0 : i32
    %c0_i32_1 = arith.constant 0 : i32
    return %arg0, %c0_i32, %arg1, %c0_i32_0 : i32, i32, i32, i32
  }
  func.func @transform_5(%arg0: i32, %arg1: i32) -> (i32, i32, i32, i32) {
    %c0_i32 = arith.constant 0 : i32
    %c0_i32_0 = arith.constant 0 : i32
    %c0_i32_1 = arith.constant 0 : i32
    return %arg0, %c0_i32, %arg1, %c0_i32_0 : i32, i32, i32, i32
  }
}

</mosaic_0001>

<bundles_post_ra>
// kernel: tpu_custom_call.1
= control target key start
LH: loop header
LB: loop body
LE: loop exit
PB: predicated region body
PF: predicated region fallthrough
CT: control target
= control target key end

     0   :  { %s1270_s0 = inlined_call_operand.hbm [shape: f32[2,8,32], index: 0, kind: input, shape index: {}]   ;;  %s1271_s1 = inlined_call_operand.hbm [shape: f32[32,96], index: 1, kind: input, shape index: {}]   ;;  %s1272_s2 = inlined_call_operand.vmem [shape: f32[1,96], index: 2, kind: input, shape index: {}]   ;;  %s1273_s3 = inlined_call_operand.hbm [shape: f32[2,2,8,16], index: 3, kind: output, shape index: {0}]   ;;  %s1274_s4 = inlined_call_operand.hbm [shape: f32[2,2,8,16], index: 4, kind: output, shape index: {1}]   ;;  %s1275_s5 = inlined_call_operand.hbm [shape: f32[2,2,8,16], index: 5, kind: output, shape index: {2}]  }
   0x1   :  { %1279 = sst [smem:[#allocation16_spill]] %s1270_s0 }
   0x2   :  { %1280 = sst [smem:[#allocation17_spill]] %s1271_s1 }
   0x3   :  { %11 = vsyncpa [#allocation3], 0 }
   0x4   :  { %13 = vsyncpa [#allocation3 + $0x1], 0 }
   0x5   :  { %14 = vsyncpa [#allocation6], 0 }
   0x6   :  { %15 = vsyncpa [#allocation4], 0 }
   0x7   :  { %17 = vsyncpa [#allocation4 + $0x1], 0 }
   0x8   :  { %18 = vsyncpa [#allocation9], 0 }
   0x9   :  { %20 = vsyncpa [#allocation9 + $0x1], 0  ;;  %s1008_s18 = smov 0   ;;  %s1010_s19 = smov 0  }
   0xa   :  { %s1012_s20 = smov 0   ;;  %s1014_s21 = smov 0  }
   0xb   :  { %s1016_s22 = smov 0   ;;  %s1018_s23 = smov 0  }
   0xc LB: > { %s1039_s24 = sadd.s32 4294967295, %s960_s23   ;;  %s1276_s25 = sadd.s32 4294967294, %s960_s23   ;;  %s960_s23 = sphi %s1018_s23, %s26_s23   ;;  %s956_s22 = sphi %s1016_s22, %s1302_s22   ;;  %s952_s21 = sphi %s1014_s21, %s1301_s21   ;;  %s948_s20 = sphi %s1012_s20, %s1300_s20   ;;  %s944_s19 = sphi %s1010_s19, %s1299_s19   ;;  %s940_s18 = sphi %s1008_s18, %s1298_s18  }
   0xd   : > { %p60_p0 = scmp.ne.s32.totalorder %s944_s19, %s940_s18  ;;  %p1278_p1 = scmp.eq.s32.totalorder %s1039_s24, 0 }
   0xe   : > { %p134_p3 = scmp.eq.s32.totalorder %s1276_s25, 1  ;;  %p626_p5 = scmp.ge.s32.totalorder %s960_s23, 1 }
   0xf   : > { %p1050_p4 = por %p1278_p1, %p60_p0  ;;  %p197_p7 = scmp.lt.s32.totalorder %s960_s23, 3 }
  0x10   : > { %p1055_p6 = por %p134_p3, %p60_p0  ;;  %s962_s29 = smov [#allocation5]  }
  0x11   : > { %p1060_p8 = pnand %p626_p5, %p197_p7  ;;  %s209_s30 = sshll.u32 %s962_s29, 4  ;;  %s210_s30 = int_to_ptr.vmem [resolvable:$true] %s209_s30 }
  0x12   : > { %s1282_s27 = scalar_select %p1055_p6, 1, 0 }
  0x13   : > { %p684_p9 = pneg %p1060_p8  ;;  %s38_s7 = sadd.s32 1, %s956_s22 }
  0x14   : > { %s777_s8 = scalar_lea.vmem %s210_s30, 512  ;;  %p785_p5 = scmp.lt.s32.totalorder %s210_s30, %s210_s30 }
  0x15   : > { %p1069_p11 = pnand %p684_p9, %p1278_p1  ;;  %p778_p13 = scmp.ne.s32.totalorder %s210_s30, %s777_s8 }
  0x16   : > { %p786_p7 = scmp.lt.s32.totalorder %s777_s8, %s777_s8 }
  0x17   : > { %p768_p12 = pneg %p1069_p11 }
  0x18   : > { %p787_p2 = por %p786_p7, %p785_p5 }
  0x19   : > { %p780_p0 = pnand %p778_p13, %p768_p12 }
  0x1b   : > { %p781_p3 = pneg %p780_p0 }
  0x1d   : > { %p788_p6 = pnand %p787_p2, %p781_p3 }
  0x1f   : > { %791 = shalt.err (!%p788_p6)
}
  0x20   : > { %s963_s9 = smov 128   ;;  %s964_s10 = smov 8  }
  0x21   : > { %s1285_s1 = sld [smem:[#allocation17_spill]]  ;;  %p40_p2 = scmp.ge.s32.totalorder %s38_s7, 2 }
  0x22   : > { %s47_s13 = sadd.s32 1, %s948_s20  ;;  %p54_p6 = scmp.ne.s32.totalorder %s948_s20, %s944_s19 }
  0x23   : > { %p55_p9 = scmp.eq.s32.totalorder %s960_s23, 0  ;;  %s1304_s7 = smov (%p40_p2, %s38_s7), 0 }
  0x24   : > { %1286 = sst [smem:[#allocation15_spill]] %s1304_s7  ;;  %p1288_p13 = scmp.eq.s32.totalorder %s1039_s24, 1 }
  0x25   : > { %p1087_p12 = por %p55_p9, %p54_p6  ;;  %s42_s16 = ssub.s32 %s956_s22, %s1304_s7 }
  0x26   : > { %p1093_p0 = por %p1288_p13, %p54_p6  ;;  %p703_p3 = scmp.lt.s32.totalorder %s960_s23, 2 }
  0x27   : > { %687 = dma.hbm_to_vmem [thread:$0]  (!%p1069_p11), %s1285_s1, 512, %s210_s30, [#allocation6], %s963_s9, %s963_s9, %s964_s10  }
  0x28   : > { %p45_p11 = scmp.eq.s32.totalorder %s42_s16, 0  ;;  %s226_s17 = sand.u32 1, %s948_s20  }
  0x29   : > { %s629_s29 = sshll.u32 %s226_s17, 3  ;;  %s630_s6 = sshll.u32 %s956_s22, 7 }
  0x2a   : > { %s1102_s30 = scalar_select %p45_p11, %s948_s20, %s47_s13  }
  0x2b   : > { %s1290_s0 = sld [smem:[#allocation16_spill]]  ;;  %s230_s11 = scalar_lea.vmem [#allocation2], %s629_s29 }
  0x2c   : > { %s238_s12 = sshll.u32 %s230_s11, 4  ;;  %p1110_p5 = pnand %p703_p3, %p1087_p12  ;;  %s239_s12 = int_to_ptr.vmem [resolvable:$true] %s238_s12 }
  0x2d   : > { %s227_s1 = scalar_lea.sflag [#allocation3], %s226_s17  ;;  %s805_s16 = scalar_lea.vmem %s239_s12, 128 }
  0x2e   : > { %p794_p7 = pneg %p1110_p5  ;;  %p806_p2 = scmp.ne.s32.totalorder %s239_s12, %s805_s16 }
  0x2f   : > { %s965_s13 = smov [#allocation2]  }
  0x30   : > { %p808_p6 = pnand %p806_p2, %p794_p7  ;;  %s810_s7 = sshll.u32 %s965_s13, 4  ;;  %s811_s7 = int_to_ptr.vmem [resolvable:$false] %s810_s7 }
  0x31   : > { %s236_s10 = scalar_lea.hbm %s1290_s0, %s630_s6  ;;  %s812_s6 = scalar_lea.vmem %s811_s7, 256 }
  0x32   : > { %p809_p9 = pneg %p808_p6  ;;  %p813_p13 = scmp.lt.s32.totalorder %s239_s12, %s811_s7 }
  0x33   : > { %p814_p11 = scmp.lt.s32.totalorder %s812_s6, %s805_s16 }
  0x35   : > { %p815_p10 = por %p814_p11, %p813_p13 }
  0x37   : > { %p816_p1 = pnand %p815_p10, %p809_p9 }
  0x39   : > { %819 = shalt.err (!%p816_p1)
}
  0x3a   : > { %691 = dma.hbm_to_vmem [thread:$0]  (!%p1110_p5), %s236_s10, 128, %s239_s12, %s227_s1  }
  0x3b   : > { %247 = sbr.rel (%p1060_p8) target bundleno = 448 (0x1c0), region = 32  ;;  %s1121_s14 = sand.u32 (!%p1060_p8), 1, %s944_s19  }
  0x3c   : > { %s632_s17 = sshll.u32 (!%p1060_p8), %s1121_s14, 3  ;;  %s250_s29 = scalar_lea.sflag (!%p1060_p8), [#allocation3], %s1121_s14 }
  0x3d   : > { %s253_s8 = scalar_lea.vmem (!%p1060_p8), [#allocation2], %s632_s17 }
  0x40   : > { %923 = dma.done.wait (%p1050_p4), %s250_s29, 128  }
  0x41   : > { %925 = vsyncadd (%p1050_p4), %s250_s29, 4294967168  ;;  %p1292_p1 = scmp.eq.s32.totalorder %s1039_s24, 0 }
  0x43   : > { %927 = dma.done.wait (%p1292_p1), [#allocation6], 512   ;;  %p1293_p10 = pmov %p1292_p1 }
  0x44   : > { %v966_v0 = vmov 0.0   ;;  %vm967_vm0 = vmmov 0   ;;  %v298_v1 = vld [vmem:[#allocation5 + $0x18] sm:$0xff]  ;;  %v297_v2 = vld [vmem:[#allocation5 + $0x10] sm:$0xff]  ;;  %v296_v3 = vld [vmem:[#allocation5 + $0x8] sm:$0xff]  ;;  %vm306_vm1 = vcmask 261120  }
  0x45   : > { %929 = vsyncadd (%p1293_p10), [#allocation6], 4294966784  ;;  %661 = vmatprep.subr.mxu0 %v966_v0  ;;  %669 = vmatprep.mubr.msk.f32.mxu0 %vm967_vm0, %v966_v0  ;;  %v295_v4 = vld [vmem:[#allocation5] sm:$0xff]  ;;  %v294_v5 = vld [vmem:[%s253_s8] sm:$0xff]  ;;  %s634_s1 = sshll.u32 %s1121_s14, 4  ;;  %vm380_vm2 = vcmask 130048  }
  0x46   : > { %662 = vmatpush3.msra.mxu0 %v298_v1  ;;  %v637_v6 = vld [vmem:[%s1272_s2] ss:$0 sm:$0xff]  ;;  %s968_s28 = smov 64   ;;  %s969_s7 = smov 96  }
  0x47   : > { %663 = vmatprep.subr.mxu0 %v966_v0  ;;  %s279_s9 = scalar_lea.vmem [#allocation7], %s634_s1  ;;  %s970_s10 = smov 112  }
  0x48   : > { %664 = vmatpush3.msra.mxu0 %v297_v2  ;;  %s971_s11 = smov 80   ;;  %s972_s12 = smov 48  }
  0x49   : > { %665 = vmatprep.subr.mxu0 %v966_v0  ;;  %s286_s16 = scalar_lea.vmem [#allocation8], %s634_s1  ;;  %s431_s6 = sshll.u32 %s279_s9, 4  ;;  %s1148_s6 = int_to_ptr.vmem [resolvable:$true] %s431_s6 }
  0x4a   : > { %666 = vmatpush3.msra.mxu0 %v296_v3  ;;  %s448_s13 = sshll.u32 %s286_s16, 4  ;;  %s411_s17 = sand.u32 1, %s1039_s24   ;;  %s1145_s13 = int_to_ptr.vmem [resolvable:$true] %s448_s13 }
  0x4b   : > { %667 = vmatprep.subr.mxu0 %v966_v0  ;;  %s1139_s29 = scalar_lea.vmem [#allocation10], %s634_s1  ;;  %s653_s25 = sshll.u32 %s952_s21, 8 }
  0x4c   : > { %668 = vmatpush3.msra.mxu0 %v295_v4  ;;  %s465_s8 = sshll.u32 %s1139_s29, 4  ;;  %s1153_s26 = scalar_lea.hbm %s1274_s4, %s653_s25  ;;  %s1160_s8 = int_to_ptr.vmem [resolvable:$true] %s465_s8 }
  0x4d   : > { %670 = vmatmul.mubr.msk.f32.vlgmr.msra.gmra.mxu0 %vm306_vm1, %v294_v5  ;;  %s1169_s24 = scalar_lea.sflag [#allocation9], %s411_s17  ;;  %s820_s1 = scalar_lea.vmem %s1145_s13, 256 }
  0x4e   : > { %p821_p4 = scmp.ne.s32.totalorder %s1145_s13, %s820_s1  ;;  %s973_s21 = smov [#allocation8]  }
  0x50   : > { %p822_p8 = pnand %p821_p4, %p1093_p0 }
  0x52   : > { %p823_p12 = pneg %p822_p8 }
 0x10d   : > { %v376_v7 = vpop.f32.mrf.mxu0 }
 0x10e   : > { %v377_v8 = vadd.f32 %v637_v6, %v376_v7 }
 0x10f   : > { %v671_v9 = vpop.f32.mrf.mxu0 }
 0x110   : > { %387 = vrot.lane.b32.xlu1 %v377_v8, %s968_s28  ;;  %383 = vrot.lane.b32.xlu0 %v377_v8, %s969_s7  ;;  %381 = vst.msk [vmem:[%s279_s9] sm:$0xff] %vm380_vm2, %v377_v8  ;;  %s1158_s7 = scalar_lea.hbm %s1273_s3, %s653_s25  ;;  %s824_s28 = sshll.u32 %s973_s21, 4  ;;  %s825_s28 = int_to_ptr.vmem [resolvable:$false] %s824_s28 }
 0x111   : > { %s826_s0 = scalar_lea.vmem %s825_s28, 512  ;;  %p827_p3 = scmp.lt.s32.totalorder %s1145_s13, %s825_s28 }
 0x112   : > { %p828_p5 = scmp.lt.s32.totalorder %s826_s0, %s820_s1 }
 0x114   : > { %391 = vrot.lane.b32.xlu1 %v377_v8, %s970_s10  ;;  %396 = vrot.lane.b32.xlu0 %v377_v8, %s971_s11  ;;  %p829_p7 = por %p828_p5, %p827_p3 }
 0x116   : > { %p830_p2 = pnand %p829_p7, %p823_p12 }
 0x118   : > { %401 = vrot.lane.b32.xlu0 %v377_v8, %s972_s12  ;;  %s1167_s12 = scalar_lea.hbm %s1275_s5, %s653_s25 }
 0x182   : > { %v388_v10 = vpop.permute.xlu1 %387  ;;  %v384_v11 = vpop.permute.xlu0 %383 }
 0x183   : > { %390 = vst.msk [vmem:[%s1139_s29] sm:$0xff] %vm380_vm2, %v388_v10  ;;  %386 = vst.msk [vmem:[%s286_s16] sm:$0xff] %vm380_vm2, %v384_v11 }
 0x186   : > { %v392_v12 = vpop.permute.xlu1 %391  ;;  %v397_v13 = vpop.permute.xlu0 %396 }
 0x187   : > { %639 = vst.msk [vmem:[%s279_s9 + $0x8] sm:$0xff] %vm380_vm2, %v392_v12  ;;  %640 = vst.msk [vmem:[%s286_s16 + $0x8] sm:$0xff] %vm380_vm2, %v397_v13 }
 0x188   : > { %833 = shalt.err (!%p830_p2)
}
 0x189   : > { %s834_s9 = scalar_lea.hbm %s1153_s26, 256  ;;  %s838_s25 = scalar_lea.hbm %s1274_s4, 512 }
 0x18a   : > { %p835_p6 = scmp.ne.s32.totalorder %s1153_s26, %s834_s9  ;;  %p839_p11 = scmp.lt.s32.totalorder %s1153_s26, %s1274_s4 }
 0x18b   : > { %p840_p1 = scmp.lt.s32.totalorder %s838_s25, %s834_s9 }
 0x18c   : > { %p836_p9 = pnand %p835_p6, %p1093_p0 }
 0x18d   : > { %p841_p10 = por %p840_p1, %p839_p11 }
 0x18e   : > { %p837_p13 = pneg %p836_p9 }
 0x190   : > { %p842_p4 = pnand %p841_p10, %p837_p13 }
 0x192   : > { %845 = shalt.err (!%p842_p4)
}
 0x193   : > { %s974_s0 = smov 128   ;;  %s975_s1 = smov 8  }
 0x194   : > { %679 = dma.vmem_to_hbm [thread:$0]  (%p1093_p0), %s1145_s13, 256, %s1153_s26, %s1169_s24, %s974_s0, %s974_s0, %s975_s1  }
 0x195   : > { %s407_s21 = scalar_lea.sflag [#allocation4], %s1121_s14  ;;  %s846_s28 = scalar_lea.vmem %s1148_s6, 256 }
 0x196   : > { %p847_p8 = scmp.ne.s32.totalorder %s1148_s6, %s846_s28  ;;  %s976_s9 = smov [#allocation7]  }
 0x197   : > { %s850_s16 = sshll.u32 %s976_s9, 4  ;;  %s851_s16 = int_to_ptr.vmem [resolvable:$false] %s850_s16 }
 0x198   : > { %p848_p12 = pnand %p847_p8, %p1093_p0  ;;  %s852_s17 = scalar_lea.vmem %s851_s16, 512 }
 0x199   : > { %p853_p5 = scmp.lt.s32.totalorder %s1148_s6, %s851_s16  ;;  %p854_p7 = scmp.lt.s32.totalorder %s852_s17, %s846_s28 }
 0x19a   : > { %p849_p3 = pneg %p848_p12 }
 0x19b   : > { %p855_p2 = por %p854_p7, %p853_p5 }
 0x19d   : > { %p856_p6 = pnand %p855_p2, %p849_p3 }
 0x19f   : > { %859 = shalt.err (!%p856_p6)
}
 0x1a0   : > { %s860_s13 = scalar_lea.hbm %s1158_s7, 256  ;;  %s864_s25 = scalar_lea.hbm %s1273_s3, 512 }
 0x1a1   : > { %p861_p9 = scmp.ne.s32.totalorder %s1158_s7, %s860_s13  ;;  %p865_p1 = scmp.lt.s32.totalorder %s1158_s7, %s1273_s3 }
 0x1a2   : > { %p866_p10 = scmp.lt.s32.totalorder %s864_s25, %s860_s13 }
 0x1a3   : > { %p862_p13 = pnand %p861_p9, %p1093_p0 }
 0x1a4   : > { %p867_p4 = por %p866_p10, %p865_p1 }
 0x1a5   : > { %p863_p11 = pneg %p862_p13 }
 0x1a7   : > { %p868_p8 = pnand %p867_p4, %p863_p11 }
 0x1a9   : > { %871 = shalt.err (!%p868_p8)
}
 0x1aa   : > { %678 = dma.vmem_to_hbm [thread:$0]  (%p1093_p0), %s1148_s6, 256, %s1158_s7, %s407_s21, %s974_s0, %s974_s0, %s975_s1   ;;  %v402_v14 = vpop.permute.xlu0 %401 }
 0x1ab   : > { %641 = vst.msk [vmem:[%s1139_s29 + $0x8] sm:$0xff] %vm380_vm2, %v402_v14  ;;  %s872_s28 = scalar_lea.vmem %s1160_s8, 256  ;;  %s977_s9 = smov [#allocation10]  }
 0x1ac   : > { %p873_p12 = scmp.ne.s32.totalorder %s1160_s8, %s872_s28  ;;  %s876_s16 = sshll.u32 %s977_s9, 4  ;;  %s877_s16 = int_to_ptr.vmem [resolvable:$false] %s876_s16 }
 0x1ad   : > { %s878_s17 = scalar_lea.vmem %s877_s16, 512  ;;  %p879_p7 = scmp.lt.s32.totalorder %s1160_s8, %s877_s16 }
 0x1ae   : > { %p874_p3 = pnand %p873_p12, %p1093_p0  ;;  %p880_p2 = scmp.lt.s32.totalorder %s878_s17, %s872_s28 }
 0x1b0   : > { %p875_p5 = pneg %p874_p3  ;;  %p881_p6 = por %p880_p2, %p879_p7 }
 0x1b2   : > { %p882_p9 = pnand %p881_p6, %p875_p5 }
 0x1b4   : > { %885 = shalt.err (!%p882_p9)
}
 0x1b5   : > { %s886_s6 = scalar_lea.hbm %s1167_s12, 256  ;;  %s890_s21 = scalar_lea.hbm %s1275_s5, 512 }
 0x1b6   : > { %p887_p13 = scmp.ne.s32.totalorder %s1167_s12, %s886_s6  ;;  %p891_p10 = scmp.lt.s32.totalorder %s1167_s12, %s1275_s5 }
 0x1b7   : > { %p892_p4 = scmp.lt.s32.totalorder %s890_s21, %s886_s6 }
 0x1b8   : > { %p888_p11 = pnand %p887_p13, %p1093_p0 }
 0x1b9   : > { %p893_p8 = por %p892_p4, %p891_p10 }
 0x1ba   : > { %p889_p1 = pneg %p888_p11 }
 0x1bc   : > { %p894_p12 = pnand %p893_p8, %p889_p1 }
 0x1be   : > { %897 = shalt.err (!%p894_p12)
}
 0x1bf   : > { %680 = dma.vmem_to_hbm [thread:$0]  (%p1093_p0), %s1160_s8, 256, %s1167_s12, %s1169_s24, %s974_s0, %s974_s0, %s975_s1  }
 0x1c0 PF: > { %s480_s26 = sand.u32 1, %s940_s18   ;;  %p1294_p3 = scmp.ne.s32.totalorder %s1282_s27, 0 }
 0x1c1   : > { %p1295_p5 = scmp.ge.s32.totalorder %s960_s23, 2  ;;  %s481_s25 = scalar_lea.sflag [#allocation4], %s480_s26 }
 0x1c3   : > { %p693_p7 = pnand %p1295_p5, %p1294_p3 }
 0x1c5   : > { %p694_p2 = pneg %p693_p7 }
 0x1c7   : > { %931 = dma.done.wait (%p694_p2), %s481_s25, 256  }
 0x1c8   : > { %933 = vsyncadd (%p694_p2), %s481_s25, 4294967040  ;;  %s1296_s15 = sadd.s32 4294967294, %s960_s23  }
 0x1c9   : > { %s489_s10 = sand.u32 1, %s1296_s15  }
 0x1ca   : > { %s490_s11 = scalar_lea.sflag [#allocation9], %s489_s10 }
 0x1cb   : > { %935 = dma.done.wait (%p694_p2), %s490_s11, 512  }
 0x1cc   : > { %937 = vsyncadd (%p694_p2), %s490_s11, 4294966784  ;;  %s26_s23 = sadd.s32 1, %s960_s23   ;;  %s1297_s27 = sld [smem:[#allocation15_spill]] }
 0x1cd   : > { %p23_p0 = scmp.ge.s32.totalorder %s26_s23, 4   ;;  %s1298_s18 = smov %s944_s19 }
 0x1ce   : > { %s1299_s19 = smov %s948_s20  ;;  %s1300_s20 = smov %s1102_s30 }
 0x1cf   : > { %s1301_s21 = smov %s956_s22  ;;  %25 = sbr.rel (!%p23_p0) target bundleno = 12 (0xc), region = 116 }
 0x1d2   : > { %s1302_s22 = smov %s1297_s27 }
 0x1d4   :  { %504 = vsyncpa [#allocation3], 1 }
 0x1d5   :  { %506 = vsyncpa [#allocation3 + $0x1], 1 }
 0x1d6   :  { %507 = vsyncpa [#allocation6], 1 }
 0x1d7   :  { %508 = vsyncpa [#allocation4], 1 }
 0x1d8   :  { %510 = vsyncpa [#allocation4 + $0x1], 1 }
 0x1d9   :  { %511 = vsyncpa [#allocation9], 1 }
 0x1da   :  { %513 = vsyncpa [#allocation9 + $0x1], 1 }

</bundles_post_ra>
